<compile_context>
chip_gen: v5e
topology: v5e:2x2
jax: 0.10.0
libtpu: 0.0.40
codegen_flags: <defaults>
</compile_context>

<pallas_src>
import functools

import jax
import jax.numpy as jnp
from jax.experimental import pallas as pl
from jax.experimental.pallas import tpu as pltpu


def _patch_embed_kernel(x_ref, w_ref, posb_ref, o_ref, *, C, ph):
    # x_ref   : (C, Hp, ph, W)        f32   one batch element (H pre-split into Hp,ph)
    # w_ref   : (C*ph*W, Wp*hidden)   bf16  block-diagonal-over-Wp projection weight
    # posb_ref: (Hp, Wp*hidden)       f32   position embedding + conv bias (resident)
    # o_ref   : (Hp, Wp*hidden)       f32
    xb = x_ref[...]

    # In-kernel patchify (pure layout): for every (c, i) kernel row, take the full
    # image row xb[c, :, i, :] of shape (Hp, W) and place it at lane offset
    # (c*ph + i)*W.  Column order (c, i, w) matches the weight's row flatten; the
    # per-patch-column (wp) split is absorbed into the block-diagonal weight, so a
    # single lane-dense matmul produces all Wp patches of a row group at once.
    per_c = []
    for c in range(C):
        rows = [xb[c, :, i, :] for i in range(ph)]       # ph x (Hp, W)
        per_c.append(jnp.concatenate(rows, axis=1))      # (Hp, ph*W)  -- 128 lanes here
    xrow = jnp.concatenate(per_c, axis=1)                # (Hp, C*ph*W)

    # bf16 operands for the MXU (cast done in-kernel on the VPU); f32 accumulation.
    proj = jnp.dot(xrow.astype(jnp.bfloat16), w_ref[...],
                   preferred_element_type=jnp.float32)   # (Hp, Wp*hidden)

    # dropout_rate = 0.0 -> identity (no-op).
    o_ref[...] = (proj + posb_ref[...]).astype(o_ref.dtype)


def prepare_patch_embed_params(conv_w, conv_b, pos_embed, img_size, patch_size):
    """One-time parameter preparation (keep OUTSIDE the per-step hot path).

    Returns:
      w_blk : (C*ph*W, Wp*hidden) bf16  block-diag-over-Wp projection weight
      posb  : (Hp, Wp*hidden)     f32   position embedding with conv bias folded in
    """
    hidden, C, ph, pw = conv_w.shape
    H, W = img_size
    assert (ph, pw) == tuple(patch_size)
    assert H % ph == 0 and W % pw == 0
    Hp, Wp = H // ph, W // pw
    N = Hp * Wp

    # w_blk[(c*ph+i)*W + wp_src*pw + j, wp_out*hidden + h] =
    #     conv_w[h, c, i, j]  if wp_src == wp_out else 0
    wt = conv_w.astype(jnp.float32).transpose(1, 2, 3, 0)          # (C, ph, pw, hidden)
    eye = jnp.eye(Wp, dtype=jnp.float32)
    w_blk = jnp.einsum("cijh,wv->ciwjvh", wt, eye)                 # (C, ph, Wp, pw, Wp, hidden)
    w_blk = w_blk.reshape(C * ph * W, Wp * hidden).astype(jnp.bfloat16)

    # Fold the conv bias into the (learnable) position embedding; lay out (Hp, Wp*hidden)
    # so it adds directly onto the kernel's lane-dense output slab (free bitcasts only).
    posb = (pos_embed.reshape(N, hidden).astype(jnp.float32)
            + conv_b.astype(jnp.float32)[None, :]).reshape(Hp, Wp * hidden)
    return w_blk, posb


def make_patch_embedding_forward(img_size, patch_size, in_channels, hidden_size):
    H, W = img_size
    ph, pw = patch_size
    Hp, Wp = H // ph, W // pw
    C = in_channels
    N = Hp * Wp

    kernel = functools.partial(_patch_embed_kernel, C=C, ph=ph)

    def forward(x, w_blk, posb):
        B = x.shape[0]
        # Free row-major split (bitcast, no copy): (B, C, H, W) -> (B, C, Hp, ph, W).
        xv = x.reshape(B, C, Hp, ph, W)
        out = pl.pallas_call(
            kernel,
            out_shape=jax.ShapeDtypeStruct((B, Hp, Wp * hidden_size), x.dtype),
            grid=(B,),
            in_specs=[
                # Per-image block of the raw (bitcast-viewed) NCHW input.
                pl.BlockSpec((None, C, Hp, ph, W), lambda b: (b, 0, 0, 0, 0)),
                # Weight and pos+bias: same block every step -> resident operands.
                pl.BlockSpec((C * ph * W, Wp * hidden_size), lambda b: (0, 0)),
                pl.BlockSpec((Hp, Wp * hidden_size), lambda b: (0, 0)),
            ],
            out_specs=pl.BlockSpec((None, Hp, Wp * hidden_size), lambda b: (b, 0, 0)),
            compiler_params=pltpu.CompilerParams(dimension_semantics=("parallel",)),
        )(xv, w_blk, posb)
        # Free bitcast back to the module's output layout (B, n_patches, hidden).
        return out.reshape(B, N, hidden_size)

    return jax.jit(forward)


if __name__ == "__main__":
    # Module hyperparameters (spatial_dims=2).
    B, C, H, W = 2, 4, 16, 16
    ph, pw = 8, 8
    hidden = 32
    Hp, Wp = H // ph, W // pw
    n_patches = Hp * Wp                 # 4
    patch_dim = C * ph * pw             # 256

    key = jax.random.PRNGKey(0)
    k_x, k_w, k_b, k_pos = jax.random.split(key, 4)

    x = jax.random.normal(k_x, (B, C, H, W), dtype=jnp.float32)
    conv_w = 0.02 * jax.random.truncated_normal(
        k_w, -2.0, 2.0, (hidden, C, ph, pw), dtype=jnp.float32)
    conv_b = 0.01 * jax.random.normal(k_b, (hidden,), dtype=jnp.float32)
    # pos_embed_type='learnable': trunc_normal(std=0.02)
    pos_embed = 0.02 * jax.random.truncated_normal(
        k_pos, -2.0, 2.0, (1, n_patches, hidden), dtype=jnp.float32)

    # One-time parameter prep (outside the hot path), then the single-call forward.
    w_blk, posb = prepare_patch_embed_params(conv_w, conv_b, pos_embed, (H, W), (ph, pw))
    forward = make_patch_embedding_forward((H, W), (ph, pw), C, hidden)

    out = forward(x, w_blk, posb)
    out = jax.block_until_ready(out)

    # Pure-JAX f32 reference (conv-as-patch-matmul).
    xp_ref = x.reshape(B, C, Hp, ph, Wp, pw).transpose(0, 2, 4, 1, 3, 5)
    xp_ref = xp_ref.reshape(B, n_patches, patch_dim)
    ref = jnp.einsum("bnp,hp->bnh", xp_ref, conv_w.reshape(hidden, patch_dim))
    ref = ref + conv_b[None, None, :] + pos_embed

    assert out.shape == (B, n_patches, hidden)
    # Tolerance accounts for bf16 operand quantization (f32 accumulation, K=256).
    assert jnp.allclose(out, ref, atol=2e-2, rtol=2e-2), float(jnp.max(jnp.abs(out - ref)))
    print("KERNEL_OK")
</pallas_src>

<mosaic_0001>
module attributes {stable_mosaic.version = 11 : i64} {
  func.func @_patch_embed_kernel(%arg0: i32, %arg1: memref<1x4x2x8x16xf32, #tpu.memory_space<vmem>>, %arg2: memref<512x64xbf16, #tpu.memory_space<vmem>>, %arg3: memref<2x64xf32, #tpu.memory_space<vmem>>, %arg4: memref<1x2x64xf32, #tpu.memory_space<vmem>>) attributes {dimension_semantics = [#tpu.dimension_semantics<parallel>], iteration_bounds = array<i64: 2>, scalar_prefetch = 0 : i64, scratch_operands = 0 : i64, tpu.core_type = #tpu.core_type<tc>, window_params = [{transform_indices = @transform_0, window_bounds = array<i64: 1, 4, 2, 8, 16>}, {pipeline_mode = #tpu.pipeline_mode<synchronous>, transform_indices = @transform_1, window_bounds = array<i64: 512, 64>}, {pipeline_mode = #tpu.pipeline_mode<synchronous>, transform_indices = @transform_2, window_bounds = array<i64: 2, 64>}, {transform_indices = @transform_3, window_bounds = array<i64: 1, 2, 64>}]} {
    %c0 = arith.constant 0 : index
    %c0_0 = arith.constant 0 : index
    %c0_1 = arith.constant 0 : index
    %c0_2 = arith.constant 0 : index
    %c0_3 = arith.constant 0 : index
    %0 = vector.load %arg1[%c0, %c0_0, %c0_1, %c0_2, %c0_3] : memref<1x4x2x8x16xf32, #tpu.memory_space<vmem>>, vector<1x4x2x8x16xf32>
    %1 = vector.shape_cast %0 : vector<1x4x2x8x16xf32> to vector<4x2x8x16xf32>
    %2 = vector.extract_strided_slice %1 {offsets = [0, 0, 0, 0], sizes = [1, 2, 1, 16], strides = [1, 1, 1, 1]} : vector<4x2x8x16xf32> to vector<1x2x1x16xf32>
    %3 = vector.shape_cast %2 : vector<1x2x1x16xf32> to vector<2x16xf32>
    %4 = vector.extract_strided_slice %1 {offsets = [0, 0, 1, 0], sizes = [1, 2, 1, 16], strides = [1, 1, 1, 1]} : vector<4x2x8x16xf32> to vector<1x2x1x16xf32>
    %5 = vector.shape_cast %4 : vector<1x2x1x16xf32> to vector<2x16xf32>
    %6 = vector.extract_strided_slice %1 {offsets = [0, 0, 2, 0], sizes = [1, 2, 1, 16], strides = [1, 1, 1, 1]} : vector<4x2x8x16xf32> to vector<1x2x1x16xf32>
    %7 = vector.shape_cast %6 : vector<1x2x1x16xf32> to vector<2x16xf32>
    %8 = vector.extract_strided_slice %1 {offsets = [0, 0, 3, 0], sizes = [1, 2, 1, 16], strides = [1, 1, 1, 1]} : vector<4x2x8x16xf32> to vector<1x2x1x16xf32>
    %9 = vector.shape_cast %8 : vector<1x2x1x16xf32> to vector<2x16xf32>
    %10 = vector.extract_strided_slice %1 {offsets = [0, 0, 4, 0], sizes = [1, 2, 1, 16], strides = [1, 1, 1, 1]} : vector<4x2x8x16xf32> to vector<1x2x1x16xf32>
    %11 = vector.shape_cast %10 : vector<1x2x1x16xf32> to vector<2x16xf32>
    %12 = vector.extract_strided_slice %1 {offsets = [0, 0, 5, 0], sizes = [1, 2, 1, 16], strides = [1, 1, 1, 1]} : vector<4x2x8x16xf32> to vector<1x2x1x16xf32>
    %13 = vector.shape_cast %12 : vector<1x2x1x16xf32> to vector<2x16xf32>
    %14 = vector.extract_strided_slice %1 {offsets = [0, 0, 6, 0], sizes = [1, 2, 1, 16], strides = [1, 1, 1, 1]} : vector<4x2x8x16xf32> to vector<1x2x1x16xf32>
    %15 = vector.shape_cast %14 : vector<1x2x1x16xf32> to vector<2x16xf32>
    %16 = vector.extract_strided_slice %1 {offsets = [0, 0, 7, 0], sizes = [1, 2, 1, 16], strides = [1, 1, 1, 1]} : vector<4x2x8x16xf32> to vector<1x2x1x16xf32>
    %17 = vector.shape_cast %16 : vector<1x2x1x16xf32> to vector<2x16xf32>
    %18 = tpu.concatenate %3, %5, %7, %9, %11, %13, %15, %17 in 1 : vector<2x16xf32>, vector<2x16xf32>, vector<2x16xf32>, vector<2x16xf32>, vector<2x16xf32>, vector<2x16xf32>, vector<2x16xf32>, vector<2x16xf32> -> vector<2x128xf32>
    %19 = vector.extract_strided_slice %1 {offsets = [1, 0, 0, 0], sizes = [1, 2, 1, 16], strides = [1, 1, 1, 1]} : vector<4x2x8x16xf32> to vector<1x2x1x16xf32>
    %20 = vector.shape_cast %19 : vector<1x2x1x16xf32> to vector<2x16xf32>
    %21 = vector.extract_strided_slice %1 {offsets = [1, 0, 1, 0], sizes = [1, 2, 1, 16], strides = [1, 1, 1, 1]} : vector<4x2x8x16xf32> to vector<1x2x1x16xf32>
    %22 = vector.shape_cast %21 : vector<1x2x1x16xf32> to vector<2x16xf32>
    %23 = vector.extract_strided_slice %1 {offsets = [1, 0, 2, 0], sizes = [1, 2, 1, 16], strides = [1, 1, 1, 1]} : vector<4x2x8x16xf32> to vector<1x2x1x16xf32>
    %24 = vector.shape_cast %23 : vector<1x2x1x16xf32> to vector<2x16xf32>
    %25 = vector.extract_strided_slice %1 {offsets = [1, 0, 3, 0], sizes = [1, 2, 1, 16], strides = [1, 1, 1, 1]} : vector<4x2x8x16xf32> to vector<1x2x1x16xf32>
    %26 = vector.shape_cast %25 : vector<1x2x1x16xf32> to vector<2x16xf32>
    %27 = vector.extract_strided_slice %1 {offsets = [1, 0, 4, 0], sizes = [1, 2, 1, 16], strides = [1, 1, 1, 1]} : vector<4x2x8x16xf32> to vector<1x2x1x16xf32>
    %28 = vector.shape_cast %27 : vector<1x2x1x16xf32> to vector<2x16xf32>
    %29 = vector.extract_strided_slice %1 {offsets = [1, 0, 5, 0], sizes = [1, 2, 1, 16], strides = [1, 1, 1, 1]} : vector<4x2x8x16xf32> to vector<1x2x1x16xf32>
    %30 = vector.shape_cast %29 : vector<1x2x1x16xf32> to vector<2x16xf32>
    %31 = vector.extract_strided_slice %1 {offsets = [1, 0, 6, 0], sizes = [1, 2, 1, 16], strides = [1, 1, 1, 1]} : vector<4x2x8x16xf32> to vector<1x2x1x16xf32>
    %32 = vector.shape_cast %31 : vector<1x2x1x16xf32> to vector<2x16xf32>
    %33 = vector.extract_strided_slice %1 {offsets = [1, 0, 7, 0], sizes = [1, 2, 1, 16], strides = [1, 1, 1, 1]} : vector<4x2x8x16xf32> to vector<1x2x1x16xf32>
    %34 = vector.shape_cast %33 : vector<1x2x1x16xf32> to vector<2x16xf32>
    %35 = tpu.concatenate %20, %22, %24, %26, %28, %30, %32, %34 in 1 : vector<2x16xf32>, vector<2x16xf32>, vector<2x16xf32>, vector<2x16xf32>, vector<2x16xf32>, vector<2x16xf32>, vector<2x16xf32>, vector<2x16xf32> -> vector<2x128xf32>
    %36 = vector.extract_strided_slice %1 {offsets = [2, 0, 0, 0], sizes = [1, 2, 1, 16], strides = [1, 1, 1, 1]} : vector<4x2x8x16xf32> to vector<1x2x1x16xf32>
    %37 = vector.shape_cast %36 : vector<1x2x1x16xf32> to vector<2x16xf32>
    %38 = vector.extract_strided_slice %1 {offsets = [2, 0, 1, 0], sizes = [1, 2, 1, 16], strides = [1, 1, 1, 1]} : vector<4x2x8x16xf32> to vector<1x2x1x16xf32>
    %39 = vector.shape_cast %38 : vector<1x2x1x16xf32> to vector<2x16xf32>
    %40 = vector.extract_strided_slice %1 {offsets = [2, 0, 2, 0], sizes = [1, 2, 1, 16], strides = [1, 1, 1, 1]} : vector<4x2x8x16xf32> to vector<1x2x1x16xf32>
    %41 = vector.shape_cast %40 : vector<1x2x1x16xf32> to vector<2x16xf32>
    %42 = vector.extract_strided_slice %1 {offsets = [2, 0, 3, 0], sizes = [1, 2, 1, 16], strides = [1, 1, 1, 1]} : vector<4x2x8x16xf32> to vector<1x2x1x16xf32>
    %43 = vector.shape_cast %42 : vector<1x2x1x16xf32> to vector<2x16xf32>
    %44 = vector.extract_strided_slice %1 {offsets = [2, 0, 4, 0], sizes = [1, 2, 1, 16], strides = [1, 1, 1, 1]} : vector<4x2x8x16xf32> to vector<1x2x1x16xf32>
    %45 = vector.shape_cast %44 : vector<1x2x1x16xf32> to vector<2x16xf32>
    %46 = vector.extract_strided_slice %1 {offsets = [2, 0, 5, 0], sizes = [1, 2, 1, 16], strides = [1, 1, 1, 1]} : vector<4x2x8x16xf32> to vector<1x2x1x16xf32>
    %47 = vector.shape_cast %46 : vector<1x2x1x16xf32> to vector<2x16xf32>
    %48 = vector.extract_strided_slice %1 {offsets = [2, 0, 6, 0], sizes = [1, 2, 1, 16], strides = [1, 1, 1, 1]} : vector<4x2x8x16xf32> to vector<1x2x1x16xf32>
    %49 = vector.shape_cast %48 : vector<1x2x1x16xf32> to vector<2x16xf32>
    %50 = vector.extract_strided_slice %1 {offsets = [2, 0, 7, 0], sizes = [1, 2, 1, 16], strides = [1, 1, 1, 1]} : vector<4x2x8x16xf32> to vector<1x2x1x16xf32>
    %51 = vector.shape_cast %50 : vector<1x2x1x16xf32> to vector<2x16xf32>
    %52 = tpu.concatenate %37, %39, %41, %43, %45, %47, %49, %51 in 1 : vector<2x16xf32>, vector<2x16xf32>, vector<2x16xf32>, vector<2x16xf32>, vector<2x16xf32>, vector<2x16xf32>, vector<2x16xf32>, vector<2x16xf32> -> vector<2x128xf32>
    %53 = vector.extract_strided_slice %1 {offsets = [3, 0, 0, 0], sizes = [1, 2, 1, 16], strides = [1, 1, 1, 1]} : vector<4x2x8x16xf32> to vector<1x2x1x16xf32>
    %54 = vector.shape_cast %53 : vector<1x2x1x16xf32> to vector<2x16xf32>
    %55 = vector.extract_strided_slice %1 {offsets = [3, 0, 1, 0], sizes = [1, 2, 1, 16], strides = [1, 1, 1, 1]} : vector<4x2x8x16xf32> to vector<1x2x1x16xf32>
    %56 = vector.shape_cast %55 : vector<1x2x1x16xf32> to vector<2x16xf32>
    %57 = vector.extract_strided_slice %1 {offsets = [3, 0, 2, 0], sizes = [1, 2, 1, 16], strides = [1, 1, 1, 1]} : vector<4x2x8x16xf32> to vector<1x2x1x16xf32>
    %58 = vector.shape_cast %57 : vector<1x2x1x16xf32> to vector<2x16xf32>
    %59 = vector.extract_strided_slice %1 {offsets = [3, 0, 3, 0], sizes = [1, 2, 1, 16], strides = [1, 1, 1, 1]} : vector<4x2x8x16xf32> to vector<1x2x1x16xf32>
    %60 = vector.shape_cast %59 : vector<1x2x1x16xf32> to vector<2x16xf32>
    %61 = vector.extract_strided_slice %1 {offsets = [3, 0, 4, 0], sizes = [1, 2, 1, 16], strides = [1, 1, 1, 1]} : vector<4x2x8x16xf32> to vector<1x2x1x16xf32>
    %62 = vector.shape_cast %61 : vector<1x2x1x16xf32> to vector<2x16xf32>
    %63 = vector.extract_strided_slice %1 {offsets = [3, 0, 5, 0], sizes = [1, 2, 1, 16], strides = [1, 1, 1, 1]} : vector<4x2x8x16xf32> to vector<1x2x1x16xf32>
    %64 = vector.shape_cast %63 : vector<1x2x1x16xf32> to vector<2x16xf32>
    %65 = vector.extract_strided_slice %1 {offsets = [3, 0, 6, 0], sizes = [1, 2, 1, 16], strides = [1, 1, 1, 1]} : vector<4x2x8x16xf32> to vector<1x2x1x16xf32>
    %66 = vector.shape_cast %65 : vector<1x2x1x16xf32> to vector<2x16xf32>
    %67 = vector.extract_strided_slice %1 {offsets = [3, 0, 7, 0], sizes = [1, 2, 1, 16], strides = [1, 1, 1, 1]} : vector<4x2x8x16xf32> to vector<1x2x1x16xf32>
    %68 = vector.shape_cast %67 : vector<1x2x1x16xf32> to vector<2x16xf32>
    %69 = tpu.concatenate %54, %56, %58, %60, %62, %64, %66, %68 in 1 : vector<2x16xf32>, vector<2x16xf32>, vector<2x16xf32>, vector<2x16xf32>, vector<2x16xf32>, vector<2x16xf32>, vector<2x16xf32>, vector<2x16xf32> -> vector<2x128xf32>
    %70 = tpu.concatenate %18, %35, %52, %69 in 1 : vector<2x128xf32>, vector<2x128xf32>, vector<2x128xf32>, vector<2x128xf32> -> vector<2x512xf32>
    %71 = arith.truncf %70 : vector<2x512xf32> to vector<2x512xbf16>
    %c0_4 = arith.constant 0 : index
    %c0_5 = arith.constant 0 : index
    %72 = vector.load %arg2[%c0_4, %c0_5] : memref<512x64xbf16, #tpu.memory_space<vmem>>, vector<512x64xbf16>
    %cst = arith.constant dense<0.000000e+00> : vector<2x64xf32>
    %73 = tpu.matmul %71, %72, %cst {dimension_numbers = #tpu.dot_dimension_numbers<[1], [0], [0], [1], [0, 0, 1, 1], [], []>} : vector<2x512xbf16>, vector<512x64xbf16>, vector<2x64xf32> -> vector<2x64xf32>
    %c0_6 = arith.constant 0 : index
    %c0_7 = arith.constant 0 : index
    %74 = vector.load %arg3[%c0_6, %c0_7] : memref<2x64xf32, #tpu.memory_space<vmem>>, vector<2x64xf32>
    %75 = arith.addf %73, %74 : vector<2x64xf32>
    %c0_8 = arith.constant 0 : index
    %c0_9 = arith.constant 0 : index
    %c0_10 = arith.constant 0 : index
    %76 = vector.load %arg4[%c0_8, %c0_9, %c0_10] : memref<1x2x64xf32, #tpu.memory_space<vmem>>, vector<1x2x64xf32>
    %77 = vector.shape_cast %76 : vector<1x2x64xf32> to vector<2x64xf32>
    %78 = vector.shape_cast %75 : vector<2x64xf32> to vector<1x2x64xf32>
    tpu.vector_store %arg4[%c0_8, %c0_9, %c0_10], %78 {strides = array<i32>} : memref<1x2x64xf32, #tpu.memory_space<vmem>>, vector<1x2x64xf32>,
    return
  }
  func.func @transform_0(%arg0: i32) -> (i32, i32, i32, i32, i32) {
    %c0_i32 = arith.constant 0 : i32
    %c0_i32_0 = arith.constant 0 : i32
    %c0_i32_1 = arith.constant 0 : i32
    %c0_i32_2 = arith.constant 0 : i32
    %c0_i32_3 = arith.constant 0 : i32
    return %arg0, %c0_i32, %c0_i32_0, %c0_i32_1, %c0_i32_2 : i32, i32, i32, i32, i32
  }
  func.func @transform_1(%arg0: i32) -> (i32, i32) {
    %c0_i32 = arith.constant 0 : i32
    %c0_i32_0 = arith.constant 0 : i32
    %c0_i32_1 = arith.constant 0 : i32
    return %c0_i32, %c0_i32_0 : i32, i32
  }
  func.func @transform_2(%arg0: i32) -> (i32, i32) {
    %c0_i32 = arith.constant 0 : i32
    %c0_i32_0 = arith.constant 0 : i32
    %c0_i32_1 = arith.constant 0 : i32
    return %c0_i32, %c0_i32_0 : i32, i32
  }
  func.func @transform_3(%arg0: i32) -> (i32, i32, i32) {
    %c0_i32 = arith.constant 0 : i32
    %c0_i32_0 = arith.constant 0 : i32
    %c0_i32_1 = arith.constant 0 : i32
    return %arg0, %c0_i32, %c0_i32_0 : i32, i32, i32
  }
}

</mosaic_0001>

<bundles_post_ra>
// kernel: forward.1
= control target key start
LH: loop header
LB: loop body
LE: loop exit
PB: predicated region body
PF: predicated region fallthrough
CT: control target
= control target key end

     0   :  { %s1056_s12 = smov 0   ;;  %s1338_s0 = inlined_call_operand.vmem [shape: f32[2,4,2,8,16], index: 0, kind: input, shape index: {}]   ;;  %s1339_s1 = inlined_call_operand.vmem [shape: bf16[512,64], index: 1, kind: input, shape index: {}]   ;;  %s1340_s2 = inlined_call_operand.vmem [shape: f32[2,64], index: 2, kind: input, shape index: {}]   ;;  %s1341_s3 = inlined_call_operand.vmem [shape: f32[2,2,64], index: 3, kind: output, shape index: {}]  }
   0x1 LB: > { %s765_s13 = sadd.s32 4294967295, %s1027_s12   ;;  %p769_p0 = scmp.ge.s32.totalorder %s1027_s12, 1  ;;  %s1027_s12 = sphi %s1056_s12, %s13_s12  }
   0x2   : > { %p137_p1 = scmp.lt.s32.totalorder %s1027_s12, 3 }
   0x4   : > { %p138_p2 = pnand %p769_p0, %p137_p1 }
   0x5   : > { %p160_p3 = scmp.lt.s32.totalorder (!%p138_p2), %s765_s13, 1  ;;  %s1029_s18 = smov (!%p138_p2), 48  }
   0x6   : > { %141 = sbr.rel (%p138_p2) target bundleno = 309 (0x135), region = 32  ;;  %s1030_s19 = smov (!%p138_p2), 16  }
   0x7   : > { %s1031_s28 = smov (!%p138_p2), 64   ;;  %s1032_s29 = smov (!%p138_p2), 32  }
   0x8   : > { %s1033_s7 = smov (!%p138_p2), 80   ;;  %s1034_s8 = smov (!%p138_p2), 96  }
   0x9   : > { %s1035_s9 = smov (!%p138_p2), 112  }
   0xb   : > { %s1343_s13 = smov (!%p160_p3, %s765_s13), 1  ;;  %vm180_vm0 = vcmask 1041409   ;;  %v927_v37 = vld [vmem:[%s1339_s1 + $0xb8] sm:$0xff]  ;;  %v926_v47 = vld [vmem:[%s1339_s1 + $0xb0] sm:$0xff]  ;;  %v925_v57 = vld [vmem:[%s1339_s1 + $0xa8] sm:$0xff]  ;;  %vm224_vm1 = vcmask 130048  }
   0xc   : > { %s903_s14 = sshll.u32 %s1343_s13, 6  ;;  %v935_v38 = vld [vmem:[%s1339_s1 + $0xf8] sm:$0xff]  ;;  %684 = vmatpush.bf16.msra.mxu2 %v927_v37  ;;  %v934_v48 = vld [vmem:[%s1339_s1 + $0xf0] sm:$0xff]  ;;  %v933_v58 = vld [vmem:[%s1339_s1 + $0xe8] sm:$0xff]  ;;  %vm226_vm2 = vcmask 261120   ;;  %vm228_vm3 = vcmask 392192  }
   0xd   : > { %s1070_s17 = scalar_lea.vmem %s1338_s0, %s903_s14  ;;  %697 = vmatpush.bf16.msra.mxu3 %v935_v38  ;;  %vm230_vm4 = vcmask 523264   ;;  %vm232_vm5 = vcmask 654336   ;;  %vm234_vm6 = vcmask 785408   ;;  %vm236_vm7 = vcmask 916480   ;;  %s772_s16 = sshll.u32 %s1343_s13, 1 }
   0xe   : > { %v1073_v0 = vld [vmem:[%s1070_s17 + $0x20] sm:$0xff]  ;;  %v1076_v1 = vld [vmem:[%s1070_s17 + $0x28] sm:$0xff]  ;;  %v1079_v2 = vld [vmem:[%s1070_s17 + $0x30] sm:$0xff]  ;;  %vm710_vm8 = vcmask 517120  }
   0xf   : > { %v1082_v3 = vld [vmem:[%s1070_s17 + $0x38] sm:$0xff]  ;;  %v307_v4 = vrot.slane %v1073_v0, 3  ;;  %v308_v5 = vrot.slane %v1076_v1, 2  ;;  %v360_v6 = vrot.slane %v1079_v2, 3  ;;  %v296_v7 = vrot.slane %v1073_v0, 1  ;;  %v1111_v28 = vld [vmem:[%s1070_s17] sm:$0xff] }
  0x10   : > { %v361_v8 = vrot.slane %v1082_v3, 2  ;;  %v349_v9 = vrot.slane %v1079_v2, 1  ;;  %v313_v10 = vrot.slane %v1073_v0, 4  ;;  %v314_v11 = vrot.slane %v1076_v1, 3  ;;  %v1114_v29 = vld [vmem:[%s1070_s17 + $0x8] sm:$0xff]  ;;  %v1117_v31 = vld [vmem:[%s1070_s17 + $0x10] sm:$0xff]  ;;  %685 = vmatpush.bf16.msra.mxu2 %v926_v47 }
  0x11   : > { %v309_v12 = vsel %vm180_vm0, %v308_v5, %v307_v4  ;;  %v297_v13 = vsel %vm180_vm0, %v1076_v1, %v296_v7  ;;  %v366_v14 = vrot.slane %v1079_v2, 4  ;;  %v367_v15 = vrot.slane %v1082_v3, 3  ;;  %v1120_v32 = vld [vmem:[%s1070_s17 + $0x18] sm:$0xff]  ;;  %698 = vmatpush.bf16.msra.mxu3 %v934_v48 }
  0x12   : > { %v362_v16 = vsel %vm180_vm0, %v361_v8, %v360_v6  ;;  %v350_v17 = vsel %vm180_vm0, %v1082_v3, %v349_v9  ;;  %v301_v18 = vrot.slane %v1073_v0, 2  ;;  %v302_v21 = vrot.slane %v1076_v1, 1 }
  0x13   : > { %v961_v19 = vpack.i.bf16 %v362_v16, %v309_v12  ;;  %v951_v20 = vpack.i.bf16 %v350_v17, %v297_v13  ;;  %v315_v22 = vsel %vm180_vm0, %v314_v11, %v313_v10  ;;  %v368_v23 = vsel %vm180_vm0, %v367_v15, %v366_v14 }
  0x14   : > { %v354_v24 = vrot.slane %v1079_v2, 2  ;;  %v355_v25 = vrot.slane %v1082_v3, 1  ;;  %v303_v26 = vsel %vm180_vm0, %v302_v21, %v301_v18  ;;  %v966_v30 = vpack.i.bf16 %v368_v23, %v315_v22  ;;  %686 = vmatpush.bf16.msra.mxu2 %v925_v57  ;;  %v931_v57 = vld [vmem:[%s1339_s1 + $0xd8] sm:$0xff] }
  0x15   : > { %962 = vrot.lane.b32.xlu1 %v961_v19, %s1029_s18  ;;  %952 = vrot.lane.b32.xlu0 %v951_v20, %s1030_s19  ;;  %v325_v33 = vrot.slane %v1073_v0, 6  ;;  %v326_v34 = vrot.slane %v1076_v1, 5  ;;  %v378_v35 = vrot.slane %v1079_v2, 6  ;;  %v379_v36 = vrot.slane %v1082_v3, 5 }
  0x16   : > { %v356_v27 = vsel %vm180_vm0, %v355_v25, %v354_v24  ;;  %v188_v40 = vrot.slane %v1111_v28, 2  ;;  %v189_v41 = vrot.slane %v1114_v29, 1  ;;  %v319_v42 = vrot.slane %v1073_v0, 5  ;;  %699 = vmatpush.bf16.msra.mxu3 %v933_v58  ;;  %v910_v58 = vld [vmem:[%s1339_s1 + $0x30] sm:$0xff] }
  0x17   : > { %v956_v39 = vpack.i.bf16 %v356_v27, %v303_v26  ;;  %v248_v43 = vrot.slane %v1117_v31, 2  ;;  %v249_v44 = vrot.slane %v1120_v32, 1  ;;  %v320_v45 = vrot.slane %v1076_v1, 4 }
  0x18   : > { %v372_v46 = vrot.slane %v1079_v2, 5  ;;  %v373_v49 = vrot.slane %v1082_v3, 4  ;;  %v327_v51 = vsel %vm180_vm0, %v326_v34, %v325_v33  ;;  %v380_v52 = vsel %vm180_vm0, %v379_v36, %v378_v35 }
  0x19   : > { %v321_v50 = vsel %vm180_vm0, %v320_v45, %v319_v42  ;;  %v190_v54 = vsel %vm180_vm0, %v189_v41, %v188_v40  ;;  %v250_v55 = vsel %vm180_vm0, %v249_v44, %v248_v43  ;;  %v194_v59 = vrot.slane %v1111_v28, 3 }
  0x1a   : > { %v374_v53 = vsel %vm180_vm0, %v373_v49, %v372_v46  ;;  %v195_v60 = vrot.slane %v1114_v29, 2  ;;  %v254_v61 = vrot.slane %v1117_v31, 3  ;;  %v255_v62 = vrot.slane %v1120_v32, 2 }
  0x1b   : > { %v971_v56 = vpack.i.bf16 %v374_v53, %v321_v50  ;;  %v183_v63 = vrot.slane %v1111_v28, 1  ;;  %v981_v4 = vpack.i.bf16 %v380_v52, %v327_v51  ;;  %v986_v5 = vpack.i.bf16 %v250_v55, %v190_v54  ;;  %v924_v52 = vld [vmem:[%s1339_s1 + $0xa0] sm:$0xff]  ;;  %v911_v54 = vld [vmem:[%s1339_s1 + $0x38] sm:$0xff] }
  0x1c   : > { %v200_v6 = vrot.slane %v1111_v28, 4  ;;  %v243_v7 = vrot.slane %v1117_v31, 1  ;;  %v201_v8 = vrot.slane %v1114_v29, 3  ;;  %v260_v9 = vrot.slane %v1117_v31, 4  ;;  %v932_v53 = vld [vmem:[%s1339_s1 + $0xe0] sm:$0xff]  ;;  %v919_v55 = vld [vmem:[%s1339_s1 + $0x78] sm:$0xff]  ;;  %687 = vmatpush.bf16.msra.mxu2 %v924_v52  ;;  %658 = vmatpush.bf16.msra.mxu0 %v911_v54 }
  0x1d   : > { %967 = vrot.lane.b32.xlu1 %v966_v30, %s1031_s28  ;;  %957 = vrot.lane.b32.xlu0 %v956_v39, %s1032_s29  ;;  %v261_v10 = vrot.slane %v1120_v32, 3  ;;  %v184_v11 = vsel %vm180_vm0, %v1114_v29, %v183_v63  ;;  %v196_v13 = vsel %vm180_vm0, %v195_v60, %v194_v59  ;;  %v256_v14 = vsel %vm180_vm0, %v255_v62, %v254_v61  ;;  %v918_v59 = vld [vmem:[%s1339_s1 + $0x70] sm:$0xff]  ;;  %v909_v62 = vld [vmem:[%s1339_s1 + $0x28] sm:$0xff] }
  0x1e   : > { %972 = vrot.lane.b32.xlu2 %v971_v56, %s1033_s7  ;;  %v244_v12 = vsel %vm180_vm0, %v1120_v32, %v243_v7  ;;  %v331_v16 = vrot.slane %v1073_v0, 7  ;;  %v332_v17 = vrot.slane %v1076_v1, 6  ;;  %v384_v18 = vrot.slane %v1079_v2, 7  ;;  %700 = vmatpush.bf16.msra.mxu3 %v932_v53  ;;  %v923_v56 = vld [vmem:[%s1339_s1 + $0x98] sm:$0xff]  ;;  %v922_v60 = vld [vmem:[%s1339_s1 + $0x90] sm:$0xff]  ;;  %v917_v63 = vld [vmem:[%s1339_s1 + $0x68] sm:$0xff] }
  0x1f   : > { %v976_v15 = vpack.i.bf16 %v244_v12, %v184_v11  ;;  %v385_v19 = vrot.slane %v1082_v3, 6  ;;  %v202_v20 = vsel %vm180_vm0, %v201_v8, %v200_v6  ;;  %v262_v21 = vsel %vm180_vm0, %v261_v10, %v260_v9  ;;  %671 = vmatpush.bf16.msra.mxu1 %v919_v55  ;;  %v930_v61 = vld [vmem:[%s1339_s1 + $0xd0] sm:$0xff]  ;;  %v908_v6 = vld [vmem:[%s1339_s1 + $0x20] sm:$0xff]  ;;  %v907_v10 = vld [vmem:[%s1339_s1 + $0x18] sm:$0xff] }
  0x20   : > { %v996_v22 = vpack.i.bf16 %v256_v14, %v196_v13  ;;  %v212_v23 = vrot.slane %v1111_v28, 6  ;;  %v213_v24 = vrot.slane %v1114_v29, 5  ;;  %v272_v25 = vrot.slane %v1117_v31, 6  ;;  %688 = vmatpush.bf16.msra.mxu2 %v923_v56  ;;  %659 = vmatpush.bf16.msra.mxu0 %v910_v58  ;;  %v916_v7 = vld [vmem:[%s1339_s1 + $0x60] sm:$0xff]  ;;  %v915_v11 = vld [vmem:[%s1339_s1 + $0x58] sm:$0xff]  ;;  %v906_v13 = vld [vmem:[%s1339_s1 + $0x10] sm:$0xff] }
  0x21   : > { %v1001_v26 = vpack.i.bf16 %v262_v21, %v202_v20  ;;  %v273_v27 = vrot.slane %v1120_v32, 5  ;;  %v333_v30 = vsel %vm180_vm0, %v332_v17, %v331_v16  ;;  %v386_v33 = vsel %vm180_vm0, %v385_v19, %v384_v18  ;;  %v920_v8 = vld [vmem:[%s1339_s1 + $0x80] sm:$0xff]  ;;  %v914_v14 = vld [vmem:[%s1339_s1 + $0x50] sm:$0xff]  ;;  %v913_v16 = vld [vmem:[%s1339_s1 + $0x48] sm:$0xff] }
  0x22   : > { %v218_v34 = vrot.slane %v1111_v28, 7  ;;  %v219_v35 = vrot.slane %v1114_v29, 6  ;;  %v278_v36 = vrot.slane %v1117_v31, 7  ;;  %v279_v37 = vrot.slane %v1120_v32, 6  ;;  %701 = vmatpush.bf16.msra.mxu3 %v931_v57  ;;  %v928_v9 = vld [vmem:[%s1339_s1 + $0xc0] sm:$0xff] }
  0x23   : > { %v991_v38 = vpack.i.bf16 %v386_v33, %v333_v30  ;;  %v206_v39 = vrot.slane %v1111_v28, 5  ;;  %v207_v40 = vrot.slane %v1114_v29, 4  ;;  %v266_v41 = vrot.slane %v1117_v31, 5  ;;  %672 = vmatpush.bf16.msra.mxu1 %v918_v59  ;;  %v904_v19 = vld [vmem:[%s1339_s1] sm:$0xff] }
  0x24   : > { %v267_v42 = vrot.slane %v1120_v32, 4  ;;  %v214_v43 = vsel %vm180_vm0, %v213_v24, %v212_v23  ;;  %v274_v44 = vsel %vm180_vm0, %v273_v27, %v272_v25  ;;  %v220_v45 = vsel %vm180_vm0, %v219_v35, %v218_v34  ;;  %689 = vmatpush.bf16.msra.mxu2 %v922_v60  ;;  %660 = vmatpush.bf16.msra.mxu0 %v909_v62  ;;  %v912_v20 = vld [vmem:[%s1339_s1 + $0x40] sm:$0xff] }
  0x25   : > { %982 = vrot.lane.b32.xlu0 %v981_v4, %s1034_s8  ;;  %987 = vrot.lane.b32.xlu1 %v986_v5, %s1032_s29  ;;  %v280_v46 = vsel %vm180_vm0, %v279_v37, %v278_v36  ;;  %v1011_v47 = vpack.i.bf16 %v274_v44, %v214_v43  ;;  %v208_v49 = vsel %vm180_vm0, %v207_v40, %v206_v39  ;;  %v921_v4 = vld [vmem:[%s1339_s1 + $0x88] sm:$0xff]  ;;  %v293_v21 = vrot.slane %v1076_v1, 7 }
  0x26   : > { %977 = vrot.lane.b32.xlu2 %v976_v15, %s1030_s19  ;;  %v1016_v48 = vpack.i.bf16 %v280_v46, %v220_v45  ;;  %v268_v50 = vsel %vm180_vm0, %v267_v42, %v266_v41  ;;  %702 = vmatpush.bf16.msra.mxu3 %v930_v61  ;;  %v929_v5 = vld [vmem:[%s1339_s1 + $0xc8] sm:$0xff]  ;;  %v179_v43 = vrot.slane %v1114_v29, 7  ;;  %v240_v52 = vrot.slane %v1120_v32, 7  ;;  %s168_s19 = scalar_lea.vmem %s1341_s3, %s772_s16 }
  0x27   : > { %v1006_v51 = vpack.i.bf16 %v268_v50, %v208_v49  ;;  %673 = vmatpush.bf16.msra.mxu1 %v917_v63  ;;  %v905_v15 = vld [vmem:[%s1339_s1 + $0x8] sm:$0xff]  ;;  %v294_v27 = vsel %vm180_vm0, %v293_v21, %v1073_v0 }
  0x28   : > { %690 = vmatpush.bf16.msra.mxu2 %v921_v4  ;;  %661 = vmatpush.bf16.msra.mxu0 %v908_v6  ;;  %v241_v32 = vsel %vm180_vm0, %v240_v52, %v1117_v31  ;;  %v181_v62 = vsel %vm180_vm0, %v179_v43, %v1111_v28 }
  0x2a   : > { %703 = vmatpush.bf16.msra.mxu3 %v929_v5 }
  0x2b   : > { %674 = vmatpush.bf16.msra.mxu1 %v916_v7 }
  0x2c   : > { %691 = vmatpush.bf16.msra.mxu2 %v920_v8  ;;  %662 = vmatpush.bf16.msra.mxu0 %v907_v10 }
  0x2d   : > { %997 = vrot.lane.b32.xlu0 %v996_v22, %s1029_s18  ;;  %1002 = vrot.lane.b32.xlu1 %v1001_v26, %s1031_s28  ;;  %v346_v22 = vrot.slane %v1082_v3, 7 }
  0x2e   : > { %992 = vrot.lane.b32.xlu2 %v991_v38, %s1035_s9  ;;  %704 = vmatpush.bf16.msra.mxu3 %v928_v9 }
  0x2f   : > { %675 = vmatpush.bf16.msra.mxu1 %v915_v11  ;;  %v347_v26 = vsel %vm180_vm0, %v346_v22, %v1079_v2 }
  0x30   : > { %663 = vmatpush.bf16.msra.mxu0 %v906_v13 }
  0x33   : > { %676 = vmatpush.bf16.msra.mxu1 %v914_v14 }
  0x34   : > { %664 = vmatpush.bf16.msra.mxu0 %v905_v15 }
  0x35   : > { %1012 = vrot.lane.b32.xlu0 %v1011_v47, %s1034_s8  ;;  %1017 = vrot.lane.b32.xlu1 %v1016_v48, %s1035_s9 }
  0x36   : > { %1007 = vrot.lane.b32.xlu2 %v1006_v51, %s1033_s7 }
  0x37   : > { %677 = vmatpush.bf16.msra.mxu1 %v913_v16 }
  0x38   : > { %665 = vmatpush.bf16.msra.mxu0 %v904_v19 }
  0x3b   : > { %678 = vmatpush.bf16.msra.mxu1 %v912_v20 }
  0x78   : > { %v973_v12 = vpop.permute.xlu2 %972 }
  0x79   : > { %v975_v46 = vunpack.i.h.bf16 %v973_v12  ;;  %v974_v47 = vunpack.i.l.bf16 %v973_v12 }
  0x80   : > { %v978_v23 = vpop.permute.xlu2 %977 }
  0x81   : > { %v980_v58 = vunpack.i.h.bf16 %v978_v23  ;;  %v979_v59 = vunpack.i.l.bf16 %v978_v23 }
  0x83   : > { %v284_v7 = vsel %vm224_vm1, %v241_v32, %v980_v58  ;;  %v225_v8 = vsel %vm224_vm1, %v181_v62, %v979_v59 }
  0x87   : > { %v963_v17 = vpop.permute.xlu1 %962  ;;  %v953_v18 = vpop.permute.xlu0 %952 }
  0x88   : > { %v955_v24 = vunpack.i.h.bf16 %v953_v18  ;;  %v954_v25 = vunpack.i.l.bf16 %v953_v18  ;;  %v965_v35 = vunpack.i.h.bf16 %v963_v17  ;;  %v964_v3 = vunpack.i.l.bf16 %v963_v17  ;;  %v993_v42 = vpop.permute.xlu2 %992 }
  0x89   : > { %v995_v50 = vunpack.i.h.bf16 %v993_v42  ;;  %v994_v51 = vunpack.i.l.bf16 %v993_v42 }
  0x8a   : > { %v390_v36 = vsel %vm224_vm1, %v347_v26, %v955_v24  ;;  %v337_v37 = vsel %vm224_vm1, %v294_v27, %v954_v25 }
  0x8f   : > { %v968_v30 = vpop.permute.xlu1 %967  ;;  %v958_v33 = vpop.permute.xlu0 %957 }
  0x90   : > { %v960_v34 = vunpack.i.h.bf16 %v958_v33  ;;  %v959_v1 = vunpack.i.l.bf16 %v958_v33  ;;  %v970_v38 = vunpack.i.h.bf16 %v968_v30  ;;  %v969_v39 = vunpack.i.l.bf16 %v968_v30  ;;  %v1008_v15 = vpop.permute.xlu2 %1007 }
  0x91   : > { %v1010_v18 = vunpack.i.h.bf16 %v1008_v15  ;;  %v1009_v19 = vunpack.i.l.bf16 %v1008_v15 }
  0x92   : > { %v338_v40 = vsel %vm226_vm2, %v337_v37, %v959_v1  ;;  %v391_v2 = vsel %vm226_vm2, %v390_v36, %v960_v34 }
  0x93   : > { %v339_v0 = vsel %vm228_vm3, %v338_v40, %v964_v3  ;;  %v392_v41 = vsel %vm228_vm3, %v391_v2, %v965_v35 }
  0x94   : > { %v340_v44 = vsel %vm230_vm4, %v339_v0, %v969_v39  ;;  %v393_v45 = vsel %vm230_vm4, %v392_v41, %v970_v38  ;;  %v465_v0 = vld [vmem:[%s1340_s2] sm:$0x3] }
  0x95   : > { %v341_v55 = vsel %vm232_vm5, %v340_v44, %v974_v47  ;;  %v394_v29 = vsel %vm232_vm5, %v393_v45, %v975_v46 }
  0x97   : > { %v983_v48 = vpop.permute.xlu0 %982  ;;  %v988_v49 = vpop.permute.xlu1 %987 }
  0x98   : > { %v985_v53 = vunpack.i.h.bf16 %v983_v48  ;;  %v984_v54 = vunpack.i.l.bf16 %v983_v48  ;;  %v990_v5 = vunpack.i.h.bf16 %v988_v49  ;;  %v989_v6 = vunpack.i.l.bf16 %v988_v49 }
  0x9a   : > { %v342_v56 = vsel %vm234_vm6, %v341_v55, %v984_v54  ;;  %v395_v57 = vsel %vm234_vm6, %v394_v29, %v985_v53  ;;  %v227_v13 = vsel %vm226_vm2, %v225_v8, %v989_v6  ;;  %v285_v31 = vsel %vm226_vm2, %v284_v7, %v990_v5 }
  0x9b   : > { %v343_v60 = vsel %vm236_vm7, %v342_v56, %v994_v51  ;;  %v396_v61 = vsel %vm236_vm7, %v395_v57, %v995_v50 }
  0x9c   : > { %v399_v63 = vpack.c.bf16 %v343_v60, %v343_v60  ;;  %v400_v4 = vpack.c.bf16 %v396_v61, %v396_v61 }
  0x9e   : > { %692 = vmatmul.bf16.vlgmr.msra.gmra.mxu2 %v399_v63  ;;  %705 = vmatmul.bf16.vlgmr.msra.gmra.mxu3 %v400_v4 }
  0x9f   : > { %v998_v9 = vpop.permute.xlu0 %997  ;;  %v1003_v10 = vpop.permute.xlu1 %1002 }
  0xa0   : > { %v1000_v11 = vunpack.i.h.bf16 %v998_v9  ;;  %v999_v12 = vunpack.i.l.bf16 %v998_v9  ;;  %v1005_v14 = vunpack.i.h.bf16 %v1003_v10  ;;  %v1004_v28 = vunpack.i.l.bf16 %v1003_v10 }
  0xa2   : > { %v229_v16 = vsel %vm228_vm3, %v227_v13, %v999_v12  ;;  %v286_v17 = vsel %vm228_vm3, %v285_v31, %v1000_v11 }
  0xa3   : > { %v231_v20 = vsel %vm230_vm4, %v229_v16, %v1004_v28  ;;  %v287_v21 = vsel %vm230_vm4, %v286_v17, %v1005_v14 }
  0xa4   : > { %v233_v30 = vsel %vm232_vm5, %v231_v20, %v1009_v19  ;;  %v288_v33 = vsel %vm232_vm5, %v287_v21, %v1010_v18 }
  0xa7   : > { %v1013_v22 = vpop.permute.xlu0 %1012  ;;  %v1018_v23 = vpop.permute.xlu1 %1017 }
  0xa8   : > { %v1015_v24 = vunpack.i.h.bf16 %v1013_v22  ;;  %v1014_v25 = vunpack.i.l.bf16 %v1013_v22  ;;  %v1020_v26 = vunpack.i.h.bf16 %v1018_v23  ;;  %v1019_v27 = vunpack.i.l.bf16 %v1018_v23 }
  0xaa   : > { %v235_v34 = vsel %vm234_vm6, %v233_v30, %v1014_v25  ;;  %v289_v1 = vsel %vm234_vm6, %v288_v33, %v1015_v24 }
  0xab   : > { %v237_v35 = vsel %vm236_vm7, %v235_v34, %v1019_v27  ;;  %v290_v3 = vsel %vm236_vm7, %v289_v1, %v1020_v26 }
  0xac   : > { %v397_v36 = vpack.c.bf16 %v237_v35, %v237_v35  ;;  %v398_v37 = vpack.c.bf16 %v290_v3, %v290_v3 }
  0xae   : > { %666 = vmatmul.bf16.vlgmr.msra.gmra.mxu0 %v397_v36  ;;  %679 = vmatmul.bf16.vlgmr.msra.gmra.mxu1 %v398_v37 }
 0x121   : > { %v693_v38 = vpop.f32.mrf.mxu2  ;;  %v706_v39 = vpop.f32.mrf.mxu3 }
 0x129   : > { %v695_v40 = vpop.f32.mrf.mxu2  ;;  %v708_v2 = vpop.f32.mrf.mxu3 }
 0x12b   : > { %v667_v41 = vpop.f32.mrf.mxu0  ;;  %v680_v42 = vpop.f32.mrf.mxu1 }
 0x12c   : > { %v668_v43 = vadd.f32 %v667_v41, %v465_v0 }
 0x12e   : > { %v681_v44 = vadd.f32 %v680_v42, %v668_v43 }
 0x130   : > { %v694_v45 = vadd.f32 %v693_v38, %v681_v44 }
 0x132   : > { %v707_v46 = vadd.f32 %v706_v39, %v694_v45 }
 0x133   : > { %v669_v47 = vpop.f32.mrf.mxu0  ;;  %v682_v48 = vpop.f32.mrf.mxu1 }
 0x134   : > { %711 = vst.msk [vmem:[%s168_s19] sm:$0x3] %vm710_vm8, %v707_v46 }
 0x135 PF: > { %s13_s12 = sadd.s32 1, %s1027_s12  }
 0x136   : > { %p10_p4 = scmp.ge.s32.totalorder %s13_s12, 4  }
 0x138   :  { %12 = sbr.rel (!%p10_p4) target bundleno = 1 (0x1), region = 62 }

</bundles_post_ra>
